<compile_context>
chip_gen: v6e
topology: v6e:2x2x1
jax: 0.10.0
libtpu: 0.0.40
codegen_flags: <defaults>
</compile_context>

<pallas_src>
import functools

import jax
import jax.numpy as jnp
from jax.experimental import pallas as pl
from jax.experimental.pallas import tpu as pltpu


def _round_up(x, m):
    return ((x + m - 1) // m) * m


def _vmem_limit_bytes():
    """Per-generation VMEM limit: ~3/4 of capacity, capped at 96 MiB."""
    cap = 64 << 20  # conservative fallback (v7x per-TensorCore VMEM)
    try:
        reported = int(pltpu.get_tpu_info().vmem_capacity_bytes)
        if reported >= (16 << 20):
            cap = reported
    except Exception:
        pass
    return min((cap * 3) // 4, 96 << 20)


# ----------------------------- kernel ----------------------------------------


def _matmul_stats_kernel(p_ref, w_ref, y_ref, stats_ref, acc_ref, *,
                         rows_last_tile, tile_m):
    """Grid (i, kk): acc += patches_tile @ W_tile (bf16 in, f32 acc).

    On the last K step: write y (bf16) and per-channel sum / sumsq (f32)
    for the BatchNorm statistics, masking padded M rows only on the last tile.
    """
    i = pl.program_id(0)
    kk = pl.program_id(1)

    @pl.when(kk == 0)
    def _init():
        acc_ref[...] = jnp.zeros_like(acc_ref)

    acc_ref[...] += jnp.dot(p_ref[...], w_ref[...],
                            preferred_element_type=jnp.float32)

    @pl.when(kk == pl.num_programs(1) - 1)
    def _finalize():
        acc = acc_ref[...]
        y_ref[...] = acc.astype(y_ref.dtype)

        def store_stats(y):
            s1 = jnp.sum(y, axis=0, keepdims=True)        # (1, C_pad)
            s2 = jnp.sum(y * y, axis=0, keepdims=True)    # (1, C_pad)
            # Single lane-dense store of both statistics.
            stats_ref[...] = jnp.concatenate([s1, s2], axis=0)[None]

        if rows_last_tile == tile_m:
            # M divides evenly -> no padded rows anywhere (static path).
            store_stats(acc)
        else:
            is_last_m = i == pl.num_programs(0) - 1

            @pl.when(is_last_m)
            def _():
                row = jax.lax.broadcasted_iota(jnp.int32, (tile_m, 1), 0)
                store_stats(jnp.where(row < rows_last_tile, acc, 0.0))

            @pl.when(jnp.logical_not(is_last_m))
            def _():
                store_stats(acc)


# ----------------------------- wrapper ----------------------------------------


def _im2col_reflect_nhwc(x_nchw, kh=4, kw=4, stride=2, pad=1):
    """NCHW f32 input -> bf16 patches (N*Ho*Wo, kh*kw*C), reflect padding.

    Column order is (kh, kw, C) so the channel axis is lane-contiguous; the
    cast to bf16 happens BEFORE the gather so the gather moves half the bytes.
    """
    x = jnp.transpose(x_nchw, (0, 2, 3, 1)).astype(jnp.bfloat16)  # NHWC bf16
    xp = jnp.pad(x, ((0, 0), (pad, pad), (pad, pad), (0, 0)), mode="reflect")
    n, hp, wp, c = xp.shape
    ho = (hp - kh) // stride + 1
    wo = (wp - kw) // stride + 1
    ii = (jnp.arange(ho) * stride)[:, None] + jnp.arange(kh)[None, :]   # (Ho, kh)
    jj = (jnp.arange(wo) * stride)[:, None] + jnp.arange(kw)[None, :]   # (Wo, kw)
    patches = xp[:, ii[:, :, None, None], jj[None, None, :, :], :]      # (N,Ho,kh,Wo,kw,C)
    patches = patches.transpose(0, 1, 3, 2, 4, 5)                       # (N,Ho,Wo,kh,kw,C)
    return patches.reshape(n * ho * wo, kh * kw * c), (n, ho, wo)


@functools.partial(jax.jit, static_argnames=("act", "eps", "tile_m", "tile_k"))
def block_forward(x, conv_weight, gamma, beta, *, act="relu", eps=1e-5,
                  tile_m=None, tile_k=None):
    """Forward of Block (down=True, use_dropout=False).

    x:           (N, C_in, H, W)   float32, NCHW
    conv_weight: (C_out, C_in, 4, 4)
    gamma, beta: (C_out,)
    returns:     (N, C_out, H//2, W//2), NCHW, float32
    """
    c_out = conv_weight.shape[0]
    patches, (n, ho, wo) = _im2col_reflect_nhwc(x)          # (M, K) bf16
    m, k = patches.shape

    c_pad = _round_up(c_out, 128)

    # --- tile sizing (bf16-aligned, VMEM-budgeted) ----------------------------
    if tile_m is None:
        tile_m = 1024
    tile_m = max(128, _round_up(tile_m, 128))
    tile_m = min(tile_m, _round_up(m, 128))

    k_align = _round_up(k, 128)
    if tile_k is None:
        tile_k = 2048
    tile_k = max(128, _round_up(tile_k, 128))
    tile_k = min(tile_k, k_align)

    vmem_limit = _vmem_limit_bytes()

    def _footprint(tm, tk):
        # double-buffered patches + weights + y, f32 acc scratch, stats.
        return (2 * tm * tk * 2 + 2 * tk * c_pad * 2 + 2 * tm * c_pad * 2
                + tm * c_pad * 4 + 4 * 2 * c_pad * 4)

    budget = (vmem_limit * 3) // 4
    while _footprint(tile_m, tile_k) > budget and tile_k > 512:
        tile_k //= 2
    while _footprint(tile_m, tile_k) > budget and tile_m > 256:
        tile_m //= 2

    grid_m = pl.cdiv(m, tile_m)
    grid_k = pl.cdiv(k_align, tile_k)
    m_pad = grid_m * tile_m
    k_pad = grid_k * tile_k
    rows_last_tile = m - (grid_m - 1) * tile_m

    # --- aligned bf16 operands (single fused pads) ----------------------------
    patches_p = jnp.pad(patches, ((0, m_pad - m), (0, k_pad - k)))
    # Weight columns ordered (kh, kw, C_in) to match patch column order.
    w_mat = conv_weight.astype(jnp.bfloat16).transpose(2, 3, 1, 0).reshape(k, c_out)
    w_p = jnp.pad(w_mat, ((0, k_pad - k), (0, c_pad - c_out)))

    kernel = functools.partial(_matmul_stats_kernel,
                               rows_last_tile=rows_last_tile, tile_m=tile_m)

    bytes_accessed = (m_pad * k_pad * 2 + grid_m * k_pad * c_pad * 2
                      + m_pad * c_pad * 2 + grid_m * 2 * c_pad * 4)

    y_pad, stats = pl.pallas_call(
        kernel,
        out_shape=(jax.ShapeDtypeStruct((m_pad, c_pad), jnp.bfloat16),
                   jax.ShapeDtypeStruct((grid_m, 2, c_pad), jnp.float32)),
        grid=(grid_m, grid_k),
        in_specs=[
            pl.BlockSpec((tile_m, tile_k), lambda i, kk: (i, kk)),
            pl.BlockSpec((tile_k, c_pad), lambda i, kk: (kk, 0)),
        ],
        out_specs=(
            pl.BlockSpec((tile_m, c_pad), lambda i, kk: (i, 0)),
            pl.BlockSpec((1, 2, c_pad), lambda i, kk: (i, 0, 0)),
        ),
        scratch_shapes=[pltpu.VMEM((tile_m, c_pad), jnp.float32)],
        compiler_params=pltpu.CompilerParams(
            dimension_semantics=("parallel", "arbitrary"),
            vmem_limit_bytes=vmem_limit),
        cost_estimate=pl.CostEstimate(
            flops=2 * m_pad * k_pad * c_pad,
            transcendentals=0,
            bytes_accessed=bytes_accessed),
    )(patches_p, w_p)

    # --- BN finalize (tiny per-channel math) ----------------------------------
    sums = jnp.sum(stats, axis=0)                          # (2, C_pad) f32
    mean = sums[0, :c_out] / m
    # TODO(synk): E[y^2]-mean^2 can lose precision if |mean| >> std; a shifted
    # sum-of-squares would be more robust for very large M.
    var = jnp.maximum(sums[1, :c_out] / m - mean * mean, 0.0)  # biased (PyTorch)
    scale = gamma.astype(jnp.float32) * jax.lax.rsqrt(var + eps)
    shift = beta.astype(jnp.float32) - mean * scale

    # --- normalize + activation + NCHW layout in ONE fused XLA op -------------
    y = y_pad[:m, :c_out].astype(jnp.float32)
    out = y * scale + shift
    if act == "relu":
        out = jnp.maximum(out, 0.0)
    else:  # LeakyReLU(0.2)
        out = jnp.where(out >= 0.0, out, 0.2 * out)
    # TODO(synk): keep NHWC when chaining Blocks; transpose kept to match the
    # PyTorch module's NCHW output contract (fused with BN+act above).
    return out.reshape(n, ho, wo, c_out).transpose(0, 3, 1, 2)


# ----------------------------- reference --------------------------------------


def _reference_forward(x, conv_weight, gamma, beta, act="relu", eps=1e-5):
    """Pure-JAX reference (sanity check)."""
    xp = jnp.pad(x, ((0, 0), (0, 0), (1, 1), (1, 1)), mode="reflect")
    y = jax.lax.conv_general_dilated(
        xp, conv_weight, window_strides=(2, 2), padding="VALID",
        dimension_numbers=("NCHW", "OIHW", "NCHW"))
    mean = jnp.mean(y, axis=(0, 2, 3), keepdims=True)
    var = jnp.mean((y - mean) ** 2, axis=(0, 2, 3), keepdims=True)
    y_hat = (y - mean) * jax.lax.rsqrt(var + eps)
    out = gamma.reshape(1, -1, 1, 1) * y_hat + beta.reshape(1, -1, 1, 1)
    if act == "relu":
        return jnp.maximum(out, 0.0)
    return jnp.where(out >= 0.0, out, 0.2 * out)


if __name__ == "__main__":
    key = jax.random.PRNGKey(0)

    # --- Test 1: default tiling (single tile), ReLU ---------------------------
    k_x, k_w, k_g, k_b, key = jax.random.split(key, 5)
    N, C_IN, C_OUT, H, W = 2, 4, 8, 16, 16
    x = jax.random.normal(k_x, (N, C_IN, H, W), dtype=jnp.float32)
    cw = 0.1 * jax.random.normal(k_w, (C_OUT, C_IN, 4, 4), dtype=jnp.float32)
    gamma = 1.0 + 0.05 * jax.random.normal(k_g, (C_OUT,), dtype=jnp.float32)
    beta = 0.05 * jax.random.normal(k_b, (C_OUT,), dtype=jnp.float32)

    out = jax.block_until_ready(block_forward(x, cw, gamma, beta, act="relu"))
    assert out.shape == (N, C_OUT, H // 2, W // 2), out.shape
    ref = _reference_forward(x, cw, gamma, beta, act="relu")
    err = float(jnp.max(jnp.abs(out - ref)))
    assert bool(jnp.allclose(out, ref, atol=3e-2, rtol=3e-2)), err

    # --- Test 2: multi-tile M grid with masked padded rows, LeakyReLU ---------
    k_x, k_w, k_g, k_b, key = jax.random.split(key, 5)
    N2, C_IN2, C_OUT2, H2, W2 = 2, 6, 10, 18, 18     # M = 2*9*9 = 162 (ragged)
    x2 = jax.random.normal(k_x, (N2, C_IN2, H2, W2), dtype=jnp.float32)
    cw2 = 0.1 * jax.random.normal(k_w, (C_OUT2, C_IN2, 4, 4), dtype=jnp.float32)
    gamma2 = 1.0 + 0.05 * jax.random.normal(k_g, (C_OUT2,), dtype=jnp.float32)
    beta2 = 0.05 * jax.random.normal(k_b, (C_OUT2,), dtype=jnp.float32)

    out2 = jax.block_until_ready(
        block_forward(x2, cw2, gamma2, beta2, act="leaky", tile_m=128))
    assert out2.shape == (N2, C_OUT2, H2 // 2, W2 // 2), out2.shape
    ref2 = _reference_forward(x2, cw2, gamma2, beta2, act="leaky")
    err2 = float(jnp.max(jnp.abs(out2 - ref2)))
    assert bool(jnp.allclose(out2, ref2, atol=3e-2, rtol=3e-2)), err2

    print("KERNEL_OK")
</pallas_src>

<mosaic_0001>
module attributes {stable_mosaic.version = 11 : i64} {
  func.func @_matmul_stats_kernel(%arg0: i32, %arg1: i32, %arg2: memref<128x128xbf16, #tpu.memory_space<vmem>>, %arg3: memref<128x128xbf16, #tpu.memory_space<vmem>>, %arg4: memref<128x128xbf16, #tpu.memory_space<vmem>>, %arg5: memref<1x2x128xf32, #tpu.memory_space<vmem>>, %arg6: memref<128x128xf32, #tpu.memory_space<vmem>>) attributes {dimension_semantics = [#tpu.dimension_semantics<parallel>, #tpu.dimension_semantics<arbitrary>], iteration_bounds = array<i64: 1, 1>, scalar_prefetch = 0 : i64, scratch_operands = 1 : i64, tpu.core_type = #tpu.core_type<tc>, window_params = [{transform_indices = @transform_0, window_bounds = array<i64: 128, 128>}, {transform_indices = @transform_1, window_bounds = array<i64: 128, 128>}, {transform_indices = @transform_2, window_bounds = array<i64: 128, 128>}, {transform_indices = @transform_3, window_bounds = array<i64: 1, 2, 128>}]} {
    %c0_i32 = arith.constant 0 : i32
    %0 = arith.cmpi eq, %arg1, %c0_i32 : i32
    %1 = arith.extui %0 : i1 to i32
    %c0_i32_0 = arith.constant 0 : i32
    %2 = arith.cmpi ne, %1, %c0_i32_0 : i32
    scf.if %2 {
      %cst_10 = arith.constant 0.000000e+00 : f32
      %12 = vector.broadcast %cst_10 : f32 to vector<128x128xf32>
      %c0_11 = arith.constant 0 : index
      %c0_12 = arith.constant 0 : index
      %13 = vector.load %arg6[%c0_11, %c0_12] : memref<128x128xf32, #tpu.memory_space<vmem>>, vector<128x128xf32>
      tpu.vector_store %arg6[%c0_11, %c0_12], %12 {strides = array<i32>} : memref<128x128xf32, #tpu.memory_space<vmem>>, vector<128x128xf32>,
    } else {
    }
    %c0 = arith.constant 0 : index
    %c0_1 = arith.constant 0 : index
    %3 = vector.load %arg6[%c0, %c0_1] : memref<128x128xf32, #tpu.memory_space<vmem>>, vector<128x128xf32>
    %c0_2 = arith.constant 0 : index
    %c0_3 = arith.constant 0 : index
    %4 = vector.load %arg2[%c0_2, %c0_3] : memref<128x128xbf16, #tpu.memory_space<vmem>>, vector<128x128xbf16>
    %c0_4 = arith.constant 0 : index
    %c0_5 = arith.constant 0 : index
    %5 = vector.load %arg3[%c0_4, %c0_5] : memref<128x128xbf16, #tpu.memory_space<vmem>>, vector<128x128xbf16>
    %cst = arith.constant dense<0.000000e+00> : vector<128x128xf32>
    %6 = tpu.matmul %4, %5, %cst {dimension_numbers = #tpu.dot_dimension_numbers<[1], [0], [0], [1], [0, 0, 1, 1], [], []>} : vector<128x128xbf16>, vector<128x128xbf16>, vector<128x128xf32> -> vector<128x128xf32>
    %7 = arith.addf %3, %6 : vector<128x128xf32>
    %c0_6 = arith.constant 0 : index
    %c0_7 = arith.constant 0 : index
    %8 = vector.load %arg6[%c0_6, %c0_7] : memref<128x128xf32, #tpu.memory_space<vmem>>, vector<128x128xf32>
    tpu.vector_store %arg6[%c0_6, %c0_7], %7 {strides = array<i32>} : memref<128x128xf32, #tpu.memory_space<vmem>>, vector<128x128xf32>,
    %c0_i32_8 = arith.constant 0 : i32
    %9 = arith.cmpi eq, %arg1, %c0_i32_8 : i32
    %10 = arith.extui %9 : i1 to i32
    %c0_i32_9 = arith.constant 0 : i32
    %11 = arith.cmpi ne, %10, %c0_i32_9 : i32
    scf.if %11 {
      %c0_10 = arith.constant 0 : index
      %c0_11 = arith.constant 0 : index
      %12 = vector.load %arg6[%c0_10, %c0_11] : memref<128x128xf32, #tpu.memory_space<vmem>>, vector<128x128xf32>
      %13 = arith.truncf %12 : vector<128x128xf32> to vector<128x128xbf16>
      %c0_12 = arith.constant 0 : index
      %c0_13 = arith.constant 0 : index
      %14 = vector.load %arg4[%c0_12, %c0_13] : memref<128x128xbf16, #tpu.memory_space<vmem>>, vector<128x128xbf16>
      tpu.vector_store %arg4[%c0_12, %c0_13], %13 {strides = array<i32>} : memref<128x128xbf16, #tpu.memory_space<vmem>>, vector<128x128xbf16>,
      %cst_14 = arith.constant dense<0.000000e+00> : vector<128xf32>
      %15 = vector.multi_reduction <add>, %12, %cst_14 [0] : vector<128x128xf32> to vector<128xf32>
      %16 = vector.shape_cast %15 : vector<128xf32> to vector<1x128xf32>
      %17 = arith.mulf %12, %12 : vector<128x128xf32>
      %cst_15 = arith.constant dense<0.000000e+00> : vector<128xf32>
      %18 = vector.multi_reduction <add>, %17, %cst_15 [0] : vector<128x128xf32> to vector<128xf32>
      %19 = vector.shape_cast %18 : vector<128xf32> to vector<1x128xf32>
      %20 = tpu.concatenate %16, %19 in 0 : vector<1x128xf32>, vector<1x128xf32> -> vector<2x128xf32>
      %21 = vector.shape_cast %20 : vector<2x128xf32> to vector<1x2x128xf32>
      %c0_16 = arith.constant 0 : index
      %c0_17 = arith.constant 0 : index
      %c0_18 = arith.constant 0 : index
      %22 = vector.load %arg5[%c0_16, %c0_17, %c0_18] : memref<1x2x128xf32, #tpu.memory_space<vmem>>, vector<1x2x128xf32>
      tpu.vector_store %arg5[%c0_16, %c0_17, %c0_18], %21 {strides = array<i32>} : memref<1x2x128xf32, #tpu.memory_space<vmem>>, vector<1x2x128xf32>,
    } else {
    }
    return
  }
  func.func @transform_0(%arg0: i32, %arg1: i32) -> (i32, i32) {
    %c0_i32 = arith.constant 0 : i32
    return %arg0, %arg1 : i32, i32
  }
  func.func @transform_1(%arg0: i32, %arg1: i32) -> (i32, i32) {
    %c0_i32 = arith.constant 0 : i32
    %c0_i32_0 = arith.constant 0 : i32
    return %arg1, %c0_i32 : i32, i32
  }
  func.func @transform_2(%arg0: i32, %arg1: i32) -> (i32, i32) {
    %c0_i32 = arith.constant 0 : i32
    %c0_i32_0 = arith.constant 0 : i32
    return %arg0, %c0_i32 : i32, i32
  }
  func.func @transform_3(%arg0: i32, %arg1: i32) -> (i32, i32, i32) {
    %c0_i32 = arith.constant 0 : i32
    %c0_i32_0 = arith.constant 0 : i32
    %c0_i32_1 = arith.constant 0 : i32
    return %arg0, %c0_i32, %c0_i32_0 : i32, i32, i32
  }
}

</mosaic_0001>

<bundles_post_ra>
// kernel: block_forward.1
= control target key start
LH: loop header
LB: loop body
LE: loop exit
PB: predicated region body
PF: predicated region fallthrough
CT: control target
= control target key end

     0   :  { %vm464_vm0 = vcmask 1040384   ;;  %s745_s1 = inlined_call_operand.vmem [shape: bf16[128,128], index: 1, kind: input, shape index: {}]   ;;  %s746_s0 = inlined_call_operand.vmem [shape: bf16[128,128], index: 0, kind: input, shape index: {}]   ;;  %s747_s2 = inlined_call_operand.vmem [shape: bf16[128,128], index: 2, kind: output, shape index: {0}]   ;;  %s748_s3 = inlined_call_operand.vmem [shape: f32[1,2,128], index: 3, kind: output, shape index: {1}]  }
   0x1   :  { %v634_v0 = vld [vmem:[%s745_s1 + $0x38] sm:$0xff]   ;;  %v635_v1 = vld [vmem:[%s745_s1 + $0x30] sm:$0xff]   ;;  %v636_v2 = vld [vmem:[%s745_s1 + $0x28] sm:$0xff]  }
   0x2   :  { %586 = vmatprep.subr.bf16.mxu0 %v634_v0  ;;  %618 = vmatprep.subr.bf16.mxu1 %v634_v0  ;;  %v637_v3 = vld [vmem:[%s745_s1 + $0x20] sm:$0xff]   ;;  %v638_v5 = vld [vmem:[%s745_s1 + $0x18] sm:$0xff]   ;;  %v639_v7 = vld [vmem:[%s745_s1 + $0x10] sm:$0xff]  }
   0x3   :  { %587 = vmatpush3.bf16.msra.mxu0 %v634_v0  ;;  %626 = vmatpush3.bf16.msra.mxu1 %v634_v0  ;;  %v642_v4 = vld [vmem:[%s746_s0] sm:$0xff]   ;;  %v640_v8 = vld [vmem:[%s745_s1 + $0x8] sm:$0xff]   ;;  %v644_v12 = vld [vmem:[%s746_s0 + $0x10] sm:$0xff]  }
   0x4   :  { %588 = vmatprep.subr.bf16.mxu0 %v635_v1  ;;  %619 = vmatprep.subr.bf16.mxu1 %v635_v1  ;;  %v646_v6 = vld [vmem:[%s746_s0 + $0x20] sm:$0xff]   ;;  %v643_v10 = vld [vmem:[%s746_s0 + $0x8] sm:$0xff]   ;;  %v648_v13 = vld [vmem:[%s746_s0 + $0x30] sm:$0xff]  }
   0x5   :  { %602 = vmatprep.mubr.bf16.mxu0 %v642_v4  ;;  %610 = vmatprep.mubr.bf16.mxu1 %v646_v6  ;;  %v641_v9 = vld [vmem:[%s745_s1] sm:$0xff]   ;;  %v647_v11 = vld [vmem:[%s746_s0 + $0x28] sm:$0xff]   ;;  %v645_v14 = vld [vmem:[%s746_s0 + $0x18] sm:$0xff]  }
   0x6   :  { %v649_v15 = vld [vmem:[%s746_s0 + $0x38] sm:$0xff]  }
   0x7   :  { %589 = vmatpush3.bf16.msra.mxu0 %v635_v1  ;;  %627 = vmatpush3.bf16.msra.mxu1 %v635_v1 }
   0x8   :  { %590 = vmatprep.subr.bf16.mxu0 %v636_v2  ;;  %620 = vmatprep.subr.bf16.mxu1 %v636_v2 }
   0xb   :  { %591 = vmatpush3.bf16.msra.mxu0 %v636_v2  ;;  %628 = vmatpush3.bf16.msra.mxu1 %v636_v2 }
   0xc   :  { %592 = vmatprep.subr.bf16.mxu0 %v637_v3  ;;  %621 = vmatprep.subr.bf16.mxu1 %v637_v3 }
   0xf   :  { %593 = vmatpush3.bf16.msra.mxu0 %v637_v3  ;;  %629 = vmatpush3.bf16.msra.mxu1 %v637_v3 }
  0x10   :  { %594 = vmatprep.subr.bf16.mxu0 %v638_v5  ;;  %622 = vmatprep.subr.bf16.mxu1 %v638_v5 }
  0x13   :  { %595 = vmatpush3.bf16.msra.mxu0 %v638_v5  ;;  %630 = vmatpush3.bf16.msra.mxu1 %v638_v5 }
  0x14   :  { %596 = vmatprep.subr.bf16.mxu0 %v639_v7  ;;  %623 = vmatprep.subr.bf16.mxu1 %v639_v7 }
  0x17   :  { %597 = vmatpush3.bf16.msra.mxu0 %v639_v7  ;;  %631 = vmatpush3.bf16.msra.mxu1 %v639_v7 }
  0x18   :  { %598 = vmatprep.subr.bf16.mxu0 %v640_v8  ;;  %624 = vmatprep.subr.bf16.mxu1 %v640_v8 }
  0x1b   :  { %599 = vmatpush3.bf16.msra.mxu0 %v640_v8  ;;  %632 = vmatpush3.bf16.msra.mxu1 %v640_v8 }
  0x1c   :  { %600 = vmatprep.subr.bf16.mxu0 %v641_v9  ;;  %625 = vmatprep.subr.bf16.mxu1 %v641_v9 }
  0x1f   :  { %601 = vmatpush3.bf16.msra.mxu0 %v641_v9  ;;  %633 = vmatpush3.bf16.msra.mxu1 %v641_v9 }
  0x22   :  { %603 = vmatmul.mubr.bf16.vlgmr.msra.gmra.mxu0 %v643_v10  ;;  %611 = vmatmul.mubr.bf16.vlgmr.msra.gmra.mxu1 %v647_v11 }
  0x23   :  { %606 = vmatprep.mubr.bf16.mxu0 %v644_v12  ;;  %614 = vmatprep.mubr.bf16.mxu1 %v648_v13 }
  0x2a   :  { %607 = vmatmul.mubr.bf16.gmra.mxu0 %v645_v14  ;;  %615 = vmatmul.mubr.bf16.gmra.mxu1 %v649_v15 }
  0xe2   :  { %v604_v16 = vpop.f32.mrf.mxu0  ;;  %v612_v17 = vpop.f32.mrf.mxu1 }
  0xe3   :  { %v429_v33 = vmul.f32 %v604_v16, %v604_v16  ;;  %v437_v3 = vmul.f32 %v612_v17, %v612_v17 }
  0xe4   :  { %v212_v18 = vpop.f32.mrf.mxu0  ;;  %v244_v19 = vpop.f32.mrf.mxu1 }
  0xe5   :  { %v427_v24 = vmul.f32 %v212_v18, %v212_v18  ;;  %v435_v61 = vmul.f32 %v244_v19, %v244_v19 }
  0xe6   :  { %v605_v20 = vpop.f32.mrf.mxu0  ;;  %v613_v21 = vpop.f32.mrf.mxu1 }
  0xe7   :  { %v531_v22 = vpack.c.bf16 %v605_v20, %v604_v16  ;;  %v551_v23 = vpack.c.bf16 %v613_v21, %v612_v17  ;;  %v430_v38 = vmul.f32 %v605_v20, %v605_v20  ;;  %v438_v6 = vmul.f32 %v613_v21, %v613_v21 }
  0xe8   :  { %v215_v25 = vpop.f32.mrf.mxu0  ;;  %v247_v26 = vpop.f32.mrf.mxu1 }
  0xe9   :  { %563 = vst [vmem:[%s747_s2 + $0x8] sm:$0xff] %v531_v22   ;;  %v526_v27 = vpack.c.bf16 %v215_v25, %v212_v18  ;;  %v406_v28 = vadd.f32 %v215_v25, %v212_v18  ;;  %v428_v29 = vmul.f32 %v215_v25, %v215_v25  ;;  %567 = vst [vmem:[%s747_s2 + $0x28] sm:$0xff] %v551_v23  }
  0xea   :  { %v546_v30 = vpack.c.bf16 %v247_v26, %v244_v19  ;;  %v608_v31 = vpop.f32.mrf.mxu0  ;;  %v616_v32 = vpop.f32.mrf.mxu1  ;;  %v436_v1 = vmul.f32 %v247_v26, %v247_v26 }
  0xeb   :  { %527 = vst [vmem:[%s747_s2] sm:$0xff] %v526_v27   ;;  %v407_v34 = vadd.f32 %v604_v16, %v406_v28  ;;  %v443_v35 = vadd.f32 %v428_v29, %v427_v24  ;;  %v433_v55 = vmul.f32 %v608_v31, %v608_v31  ;;  %v441_v15 = vmul.f32 %v616_v32, %v616_v32 }
  0xec   :  { %566 = vst [vmem:[%s747_s2 + $0x20] sm:$0xff] %v546_v30   ;;  %v228_v36 = vpop.f32.mrf.mxu0  ;;  %v260_v37 = vpop.f32.mrf.mxu1 }
  0xed   :  { %v444_v39 = vadd.f32 %v443_v35, %v429_v33  ;;  %v408_v40 = vadd.f32 %v605_v20, %v407_v34  ;;  %v431_v44 = vmul.f32 %v228_v36, %v228_v36  ;;  %v439_v10 = vmul.f32 %v260_v37, %v260_v37 }
  0xee   :  { %v609_v41 = vpop.f32.mrf.mxu0  ;;  %v617_v42 = vpop.f32.mrf.mxu1 }
  0xef   :  { %v409_v43 = vadd.f32 %v408_v40, %v228_v36  ;;  %v445_v45 = vadd.f32 %v444_v39, %v430_v38  ;;  %v541_v46 = vpack.c.bf16 %v609_v41, %v608_v31  ;;  %v561_v48 = vpack.c.bf16 %v617_v42, %v616_v32 }
  0xf0   :  { %v231_v47 = vpop.f32.mrf.mxu0  ;;  %v263_v49 = vpop.f32.mrf.mxu1  ;;  %v434_v58 = vmul.f32 %v609_v41, %v609_v41  ;;  %v442_v20 = vmul.f32 %v617_v42, %v617_v42 }
  0xf1   :  { %v446_v50 = vadd.f32 %v445_v45, %v431_v44  ;;  %565 = vst [vmem:[%s747_s2 + $0x18] sm:$0xff] %v541_v46   ;;  %v536_v51 = vpack.c.bf16 %v231_v47, %v228_v36  ;;  %v410_v52 = vadd.f32 %v409_v43, %v231_v47  ;;  %v432_v53 = vmul.f32 %v231_v47, %v231_v47 }
  0xf2   :  { %569 = vst [vmem:[%s747_s2 + $0x38] sm:$0xff] %v561_v48   ;;  %v556_v54 = vpack.c.bf16 %v263_v49, %v260_v37  ;;  %v440_v14 = vmul.f32 %v263_v49, %v263_v49 }
  0xf3   :  { %564 = vst [vmem:[%s747_s2 + $0x10] sm:$0xff] %v536_v51   ;;  %v411_v56 = vadd.f32 %v608_v31, %v410_v52  ;;  %v447_v57 = vadd.f32 %v446_v50, %v432_v53 }
  0xf4   :  { %568 = vst [vmem:[%s747_s2 + $0x30] sm:$0xff] %v556_v54  }
  0xf5   :  { %v412_v59 = vadd.f32 %v609_v41, %v411_v56  ;;  %v448_v60 = vadd.f32 %v447_v57, %v433_v55 }
  0xf7   :  { %v449_v62 = vadd.f32 %v448_v60, %v434_v58  ;;  %v413_v63 = vadd.f32 %v412_v59, %v244_v19 }
  0xf9   :  { %v414_v0 = vadd.f32 %v413_v63, %v247_v26  ;;  %v450_v2 = vadd.f32 %v449_v62, %v435_v61 }
  0xfb   :  { %v415_v4 = vadd.f32 %v612_v17, %v414_v0  ;;  %v451_v5 = vadd.f32 %v450_v2, %v436_v1 }
  0xfd   :  { %v452_v7 = vadd.f32 %v451_v5, %v437_v3  ;;  %v416_v8 = vadd.f32 %v613_v21, %v415_v4 }
  0xff   :  { %v417_v9 = vadd.f32 %v416_v8, %v260_v37  ;;  %v453_v11 = vadd.f32 %v452_v7, %v438_v6 }
 0x101   :  { %v454_v12 = vadd.f32 %v453_v11, %v439_v10  ;;  %v418_v13 = vadd.f32 %v417_v9, %v263_v49 }
 0x103   :  { %v419_v16 = vadd.f32 %v616_v32, %v418_v13  ;;  %v455_v18 = vadd.f32 %v454_v12, %v440_v14 }
 0x105   :  { %v420_v19 = vadd.f32 %v617_v42, %v419_v16  ;;  %v456_v22 = vadd.f32 %v455_v18, %v441_v15 }
 0x107   :  { %v421_v23 = vrot.slane %v420_v19, 4  ;;  %v457_v24 = vadd.f32 %v456_v22, %v442_v20 }
 0x109   :  { %v422_v25 = vadd.f32 %v421_v23, %v420_v19  ;;  %v458_v17 = vrot.slane %v457_v24, 4 }
 0x10b   :  { %v423_v26 = vrot.slane %v422_v25, 2  ;;  %v459_v27 = vadd.f32 %v458_v17, %v457_v24 }
 0x10d   :  { %v424_v28 = vadd.f32 %v423_v26, %v422_v25  ;;  %v460_v21 = vrot.slane %v459_v27, 2 }
 0x10f   :  { %v425_v29 = vrot.slane %v424_v28, 1  ;;  %v461_v30 = vadd.f32 %v460_v21, %v459_v27 }
 0x111   :  { %v462_v31 = vrot.slane %v461_v30, 1  ;;  %v426_v33 = vadd.f32 %v425_v29, %v424_v28 }
 0x113   :  { %v463_v34 = vadd.f32 %v462_v31, %v461_v30 }
 0x115   :  { %v465_v35 = vsel %vm464_vm0, %v426_v33, %v463_v34 }
 0x116   :  { %466 = vst [vmem:[%s748_s3] sm:$0x3] %v465_v35 }

</bundles_post_ra>
